<compile_context>
chip_gen: v5e
topology: v5e:2x2
jax: 0.10.0
libtpu: 0.0.40
codegen_flags: <defaults>
</compile_context>

<pallas_src>
import jax
import jax.numpy as jnp
from jax import lax
from jax.experimental import pallas as pl
from jax.experimental.pallas import tpu as pltpu

EMB = 128  # embedding_size in the reference module


def _round_up(x, m):
    return (x + m - 1) // m * m


def _cdiv(a, b):
    return (a + b - 1) // b


def _vmem_limit_bytes():
    # ~half of physical VMEM, clamped to [32, 96] MiB.
    # v5e/v6e (128 MiB phys) -> 64 MiB; v7x (64 MiB phys) -> 32 MiB.
    try:
        cap = int(getattr(pltpu.get_tpu_info(), "vmem_capacity_bytes", 0))
        if cap > 0:
            return int(max(32 * 1024 * 1024, min(96 * 1024 * 1024, cap // 2)))
    except Exception:
        pass
    return 32 * 1024 * 1024  # v7x-safe fallback


def _mlp_kernel(ue_ref, me_ref,
                w1a_ref, w1b_ref, w2_ref, w3_ref, w4_ref, w5t_ref,
                bias_ref, out_ref):
    f32 = jnp.float32
    bf16 = jnp.bfloat16

    # Packed bias slab (one resident (8,128) f32 block).
    b1 = bias_ref[0:1, :]       # (1, 128)
    b2 = bias_ref[1:2, :64]     # (1, 64)
    b3 = bias_ref[2:3, :32]     # (1, 32)
    b4 = bias_ref[3:4, :16]     # (1, 16)
    b5 = bias_ref[4:5, 0:1]     # (1, 1)

    # fully_conn_1 (256 -> 128): split weight, no concat copy.
    # bf16 MXU operands, f32 accumulation; bias-add / ReLU in f32.
    h = (jnp.dot(ue_ref[...], w1a_ref[...], preferred_element_type=f32)
         + jnp.dot(me_ref[...], w1b_ref[...], preferred_element_type=f32))
    h = jnp.maximum(h + b1, 0.0)        # dropout_1 = identity (eval)

    # fully_conn_2 (128 -> 64) + ReLU
    h = jnp.dot(h.astype(bf16), w2_ref[...], preferred_element_type=f32)
    h = jnp.maximum(h + b2, 0.0)

    # fully_conn_3 (64 -> 32) + ReLU
    h = jnp.dot(h.astype(bf16), w3_ref[...], preferred_element_type=f32)
    h = jnp.maximum(h + b3, 0.0)

    # fully_conn_4 (32 -> 16) + ReLU
    h = jnp.dot(h.astype(bf16), w4_ref[...], preferred_element_type=f32)
    h = jnp.maximum(h + b4, 0.0)

    # output_layer (16 -> 1), lane-dense: contract the 16-wide feature axis of
    # h against w5^T replicated to 8 sublanes -> (8, TB); the batch lands on
    # lanes so the store is a full-lane unmasked vst, not a last-dim-1 store.
    out_ref[...] = lax.dot_general(
        w5t_ref[...], h.astype(bf16),
        dimension_numbers=(((1,), (1,)), ((), ())),
        preferred_element_type=f32) + b5


def movielens_forward(user_emb_table, movie_emb_table, params, users, movies,
                      *, max_batch_tile=4096, min_grid_tiles=2):
    """params: w1a/w1b/w2/w3/w4 bf16 [in,out]; w5t (8,16) bf16; bias_slab (8,128) f32."""
    B = users.shape[0]

    # --- batch tiling (padding-aware, lane-aligned) -------------------------
    num_tiles = max(1, _cdiv(B, max_batch_tile))
    if B >= min_grid_tiles * 256:
        # Guarantee >=2 grid tiles on large batches so the "parallel" axis can
        # split across v7x's two TensorCores (and restore DMA/compute overlap).
        num_tiles = max(num_tiles, min_grid_tiles)
    TB = _round_up(_cdiv(B, num_tiles), 128)
    B_pad = num_tiles * TB

    pad = B_pad - B
    users_p = jnp.pad(users, (0, pad))      # padded rows gather table row 0,
    movies_p = jnp.pad(movies, (0, pad))    # computed then sliced off (benign)

    # Embedding row gather (bf16 rows).  allow_input_fusion on these two
    # operands lets XLA fuse the gather into the pallas_call input stream.
    ue = jnp.take(user_emb_table, users_p, axis=0)    # (B_pad, EMB) bf16
    me = jnp.take(movie_emb_table, movies_p, axis=0)  # (B_pad, EMB) bf16

    args = (ue, me,
            params["w1a"], params["w1b"], params["w2"], params["w3"],
            params["w4"], params["w5t"], params["bias_slab"])

    def _resident(a):  # whole array in VMEM, same block every grid step
        return pl.BlockSpec(a.shape, lambda *_: (0,) * a.ndim)

    emb_spec = pl.BlockSpec((TB, EMB), lambda i: (i, 0))
    if num_tiles >= 3:
        # Deeper pipelining of the embedding stream once there are enough grid
        # steps for it to matter; tiles are small so the VMEM cost is tiny.
        try:
            emb_spec = pl.BlockSpec((TB, EMB), lambda i: (i, 0),
                                    pipeline_mode=pl.Buffered(3))
        except (TypeError, AttributeError):
            pass  # older jax: keep default depth-2 double buffering

    in_specs = [emb_spec, emb_spec] + [_resident(a) for a in args[2:]]
    out_specs = pl.BlockSpec((8, TB), lambda i: (0, i))

    # Advisory cost: weights counted once, embeddings read once, slab written.
    flops = 2 * B_pad * (2 * EMB * 128 + 128 * 64 + 64 * 32 + 32 * 16 + 16 * 8)
    weight_bytes = sum(int(a.size) * a.dtype.itemsize for a in args[2:])
    bytes_accessed = int(weight_bytes + 2 * B_pad * EMB * 2 + 8 * B_pad * 4)

    out = pl.pallas_call(
        _mlp_kernel,
        out_shape=jax.ShapeDtypeStruct((8, B_pad), jnp.float32),
        grid=(num_tiles,),
        in_specs=in_specs,
        out_specs=out_specs,
        compiler_params=pltpu.CompilerParams(
            dimension_semantics=("parallel",),   # v7x: tiles across 2 TCs
            allow_input_fusion=[True, True] + [False] * (len(args) - 2),
            vmem_limit_bytes=_vmem_limit_bytes()),
        cost_estimate=pl.CostEstimate(
            flops=int(flops), transcendentals=0,
            bytes_accessed=bytes_accessed),
    )(*args)

    return out[0, :B][:, None]   # (B, 1) float32


def init_params(key, n_users, n_movies, embedding_size=EMB):
    ks = jax.random.split(key, 12)

    def lin(kw, kb, fan_in, fan_out):
        # PyTorch Linear default init: U(-1/sqrt(fan_in), 1/sqrt(fan_in))
        bound = 1.0 / float(fan_in) ** 0.5
        w = jax.random.uniform(kw, (fan_in, fan_out), jnp.float32, -bound, bound)
        b = jax.random.uniform(kb, (1, fan_out), jnp.float32, -bound, bound)
        return w.astype(jnp.bfloat16), b   # bf16 MXU operand, f32 bias

    user_emb = jax.random.normal(ks[0], (n_users, embedding_size),
                                 jnp.float32).astype(jnp.bfloat16)
    movie_emb = jax.random.normal(ks[1], (n_movies, embedding_size),
                                  jnp.float32).astype(jnp.bfloat16)

    w1, b1 = lin(ks[2], ks[3], embedding_size * 2, 128)
    w2, b2 = lin(ks[4], ks[5], 128, 64)
    w3, b3 = lin(ks[6], ks[7], 64, 32)
    w4, b4 = lin(ks[8], ks[9], 32, 16)
    w5, b5 = lin(ks[10], ks[11], 16, 1)

    # Kernel-side packing done ONCE here (not per forward call):
    #   * w5^T replicated to 8 sublanes -> final matmul yields a native
    #     lane-dense (8, TB) tile.
    #   * all biases packed into a single resident (8, 128) f32 slab.
    w5t = jnp.tile(w5.T, (8, 1)).astype(jnp.bfloat16)       # (8, 16)
    bias_slab = jnp.zeros((8, 128), jnp.float32)
    bias_slab = bias_slab.at[0, :128].set(b1[0])
    bias_slab = bias_slab.at[1, :64].set(b2[0])
    bias_slab = bias_slab.at[2, :32].set(b3[0])
    bias_slab = bias_slab.at[3, :16].set(b4[0])
    bias_slab = bias_slab.at[4, 0].set(b5[0, 0])

    params = dict(w1a=w1[:embedding_size], w1b=w1[embedding_size:],
                  w2=w2, w3=w3, w4=w4, w5t=w5t, bias_slab=bias_slab,
                  # plain copies kept for the pure-JAX reference check:
                  b1=b1, b2=b2, b3=b3, b4=b4, b5=b5, w5=w5)
    return user_emb, movie_emb, params


def reference_forward(user_emb_table, movie_emb_table, params, users, movies):
    """Plain-JAX forward with identical bf16-operand / f32-accumulation math."""
    bf16, f32 = jnp.bfloat16, jnp.float32
    ue = jnp.take(user_emb_table, users, axis=0)
    me = jnp.take(movie_emb_table, movies, axis=0)
    x = jnp.concatenate([ue, me], axis=1)                          # (B, 2*EMB)
    w1 = jnp.concatenate([params["w1a"], params["w1b"]], axis=0)
    h = jnp.maximum(jnp.dot(x, w1, preferred_element_type=f32) + params["b1"], 0.0)
    h = jnp.maximum(jnp.dot(h.astype(bf16), params["w2"],
                            preferred_element_type=f32) + params["b2"], 0.0)
    h = jnp.maximum(jnp.dot(h.astype(bf16), params["w3"],
                            preferred_element_type=f32) + params["b3"], 0.0)
    h = jnp.maximum(jnp.dot(h.astype(bf16), params["w4"],
                            preferred_element_type=f32) + params["b4"], 0.0)
    return jnp.dot(h.astype(bf16), params["w5"],
                   preferred_element_type=f32) + params["b5"]


if __name__ == "__main__":
    key = jax.random.PRNGKey(0)
    n_users, n_movies = 64, 96

    user_emb, movie_emb, params = init_params(key, n_users, n_movies)

    # batch=8 exercises the single-tile path; batch=600 exercises the
    # multi-tile ("parallel" grid axis) path with padding-aware TB selection.
    for batch in (8, 600):
        k_u, k_m = jax.random.split(jax.random.PRNGKey(batch))
        users = jax.random.randint(k_u, (batch,), 0, n_users, dtype=jnp.int32)
        movies = jax.random.randint(k_m, (batch,), 0, n_movies, dtype=jnp.int32)

        out = movielens_forward(user_emb, movie_emb, params, users, movies)
        out = jax.block_until_ready(out)

        ref = reference_forward(user_emb, movie_emb, params, users, movies)
        assert out.shape == (batch, 1), out.shape
        assert jnp.allclose(out, ref, atol=5e-3, rtol=5e-3), (out, ref)

    print("KERNEL_OK")
</pallas_src>

<mosaic_0001>
module attributes {stable_mosaic.version = 11 : i64} {
  func.func @_mlp_kernel(%arg0: i32, %arg1: memref<128x128xbf16, #tpu.memory_space<vmem>>, %arg2: memref<128x128xbf16, #tpu.memory_space<vmem>>, %arg3: memref<128x128xbf16, #tpu.memory_space<vmem>>, %arg4: memref<128x128xbf16, #tpu.memory_space<vmem>>, %arg5: memref<128x64xbf16, #tpu.memory_space<vmem>>, %arg6: memref<64x32xbf16, #tpu.memory_space<vmem>>, %arg7: memref<32x16xbf16, #tpu.memory_space<vmem>>, %arg8: memref<8x16xbf16, #tpu.memory_space<vmem>>, %arg9: memref<8x128xf32, #tpu.memory_space<vmem>>, %arg10: memref<8x128xf32, #tpu.memory_space<vmem>>) attributes {dimension_semantics = [#tpu.dimension_semantics<parallel>], iteration_bounds = array<i64: 1>, scalar_prefetch = 0 : i64, scratch_operands = 0 : i64, tpu.core_type = #tpu.core_type<tc>, window_params = [{transform_indices = @transform_0, window_bounds = array<i64: 128, 128>}, {transform_indices = @transform_1, window_bounds = array<i64: 128, 128>}, {pipeline_mode = #tpu.pipeline_mode<synchronous>, transform_indices = @transform_2, window_bounds = array<i64: 128, 128>}, {pipeline_mode = #tpu.pipeline_mode<synchronous>, transform_indices = @transform_3, window_bounds = array<i64: 128, 128>}, {pipeline_mode = #tpu.pipeline_mode<synchronous>, transform_indices = @transform_4, window_bounds = array<i64: 128, 64>}, {pipeline_mode = #tpu.pipeline_mode<synchronous>, transform_indices = @transform_5, window_bounds = array<i64: 64, 32>}, {pipeline_mode = #tpu.pipeline_mode<synchronous>, transform_indices = @transform_6, window_bounds = array<i64: 32, 16>}, {pipeline_mode = #tpu.pipeline_mode<synchronous>, transform_indices = @transform_7, window_bounds = array<i64: 8, 16>}, {pipeline_mode = #tpu.pipeline_mode<synchronous>, transform_indices = @transform_8, window_bounds = array<i64: 8, 128>}, {transform_indices = @transform_9, window_bounds = array<i64: 8, 128>}]} {
    %c0 = arith.constant 0 : index
    %c0_0 = arith.constant 0 : index
    %0 = vector.load %arg9[%c0, %c0_0] : memref<8x128xf32, #tpu.memory_space<vmem>>, vector<1x128xf32>
    %c1 = arith.constant 1 : index
    %c0_1 = arith.constant 0 : index
    %1 = vector.load %arg9[%c1, %c0_1] : memref<8x128xf32, #tpu.memory_space<vmem>>, vector<1x64xf32>
    %c2 = arith.constant 2 : index
    %c0_2 = arith.constant 0 : index
    %2 = vector.load %arg9[%c2, %c0_2] : memref<8x128xf32, #tpu.memory_space<vmem>>, vector<1x32xf32>
    %c3 = arith.constant 3 : index
    %c0_3 = arith.constant 0 : index
    %3 = vector.load %arg9[%c3, %c0_3] : memref<8x128xf32, #tpu.memory_space<vmem>>, vector<1x16xf32>
    %c4 = arith.constant 4 : index
    %c0_4 = arith.constant 0 : index
    %4 = vector.load %arg9[%c4, %c0_4] : memref<8x128xf32, #tpu.memory_space<vmem>>, vector<1x1xf32>
    %c0_5 = arith.constant 0 : index
    %c0_6 = arith.constant 0 : index
    %5 = vector.load %arg1[%c0_5, %c0_6] : memref<128x128xbf16, #tpu.memory_space<vmem>>, vector<128x128xbf16>
    %c0_7 = arith.constant 0 : index
    %c0_8 = arith.constant 0 : index
    %6 = vector.load %arg3[%c0_7, %c0_8] : memref<128x128xbf16, #tpu.memory_space<vmem>>, vector<128x128xbf16>
    %cst = arith.constant dense<0.000000e+00> : vector<128x128xf32>
    %7 = tpu.matmul %5, %6, %cst {dimension_numbers = #tpu.dot_dimension_numbers<[1], [0], [0], [1], [0, 0, 1, 1], [], []>} : vector<128x128xbf16>, vector<128x128xbf16>, vector<128x128xf32> -> vector<128x128xf32>
    %c0_9 = arith.constant 0 : index
    %c0_10 = arith.constant 0 : index
    %8 = vector.load %arg2[%c0_9, %c0_10] : memref<128x128xbf16, #tpu.memory_space<vmem>>, vector<128x128xbf16>
    %c0_11 = arith.constant 0 : index
    %c0_12 = arith.constant 0 : index
    %9 = vector.load %arg4[%c0_11, %c0_12] : memref<128x128xbf16, #tpu.memory_space<vmem>>, vector<128x128xbf16>
    %cst_13 = arith.constant dense<0.000000e+00> : vector<128x128xf32>
    %10 = tpu.matmul %8, %9, %cst_13 {dimension_numbers = #tpu.dot_dimension_numbers<[1], [0], [0], [1], [0, 0, 1, 1], [], []>} : vector<128x128xbf16>, vector<128x128xbf16>, vector<128x128xf32> -> vector<128x128xf32>
    %11 = arith.addf %7, %10 : vector<128x128xf32>
    %12 = vector.broadcast %0 : vector<1x128xf32> to vector<128x128xf32>
    %13 = arith.addf %11, %12 : vector<128x128xf32>
    %cst_14 = arith.constant 0.000000e+00 : f32
    %14 = vector.broadcast %cst_14 : f32 to vector<128x128xf32>
    %15 = arith.maximumf %13, %14 : vector<128x128xf32>
    %16 = arith.truncf %15 : vector<128x128xf32> to vector<128x128xbf16>
    %c0_15 = arith.constant 0 : index
    %c0_16 = arith.constant 0 : index
    %17 = vector.load %arg5[%c0_15, %c0_16] : memref<128x64xbf16, #tpu.memory_space<vmem>>, vector<128x64xbf16>
    %cst_17 = arith.constant dense<0.000000e+00> : vector<128x64xf32>
    %18 = tpu.matmul %16, %17, %cst_17 {dimension_numbers = #tpu.dot_dimension_numbers<[1], [0], [0], [1], [0, 0, 1, 1], [], []>} : vector<128x128xbf16>, vector<128x64xbf16>, vector<128x64xf32> -> vector<128x64xf32>
    %19 = vector.broadcast %1 : vector<1x64xf32> to vector<128x64xf32>
    %20 = arith.addf %18, %19 : vector<128x64xf32>
    %cst_18 = arith.constant 0.000000e+00 : f32
    %21 = vector.broadcast %cst_18 : f32 to vector<128x64xf32>
    %22 = arith.maximumf %20, %21 : vector<128x64xf32>
    %23 = arith.truncf %22 : vector<128x64xf32> to vector<128x64xbf16>
    %c0_19 = arith.constant 0 : index
    %c0_20 = arith.constant 0 : index
    %24 = vector.load %arg6[%c0_19, %c0_20] : memref<64x32xbf16, #tpu.memory_space<vmem>>, vector<64x32xbf16>
    %cst_21 = arith.constant dense<0.000000e+00> : vector<128x32xf32>
    %25 = tpu.matmul %23, %24, %cst_21 {dimension_numbers = #tpu.dot_dimension_numbers<[1], [0], [0], [1], [0, 0, 1, 1], [], []>} : vector<128x64xbf16>, vector<64x32xbf16>, vector<128x32xf32> -> vector<128x32xf32>
    %26 = vector.broadcast %2 : vector<1x32xf32> to vector<128x32xf32>
    %27 = arith.addf %25, %26 : vector<128x32xf32>
    %cst_22 = arith.constant 0.000000e+00 : f32
    %28 = vector.broadcast %cst_22 : f32 to vector<128x32xf32>
    %29 = arith.maximumf %27, %28 : vector<128x32xf32>
    %30 = arith.truncf %29 : vector<128x32xf32> to vector<128x32xbf16>
    %c0_23 = arith.constant 0 : index
    %c0_24 = arith.constant 0 : index
    %31 = vector.load %arg7[%c0_23, %c0_24] : memref<32x16xbf16, #tpu.memory_space<vmem>>, vector<32x16xbf16>
    %cst_25 = arith.constant dense<0.000000e+00> : vector<128x16xf32>
    %32 = tpu.matmul %30, %31, %cst_25 {dimension_numbers = #tpu.dot_dimension_numbers<[1], [0], [0], [1], [0, 0, 1, 1], [], []>} : vector<128x32xbf16>, vector<32x16xbf16>, vector<128x16xf32> -> vector<128x16xf32>
    %33 = vector.broadcast %3 : vector<1x16xf32> to vector<128x16xf32>
    %34 = arith.addf %32, %33 : vector<128x16xf32>
    %cst_26 = arith.constant 0.000000e+00 : f32
    %35 = vector.broadcast %cst_26 : f32 to vector<128x16xf32>
    %36 = arith.maximumf %34, %35 : vector<128x16xf32>
    %c0_27 = arith.constant 0 : index
    %c0_28 = arith.constant 0 : index
    %37 = vector.load %arg8[%c0_27, %c0_28] : memref<8x16xbf16, #tpu.memory_space<vmem>>, vector<8x16xbf16>
    %38 = arith.truncf %36 : vector<128x16xf32> to vector<128x16xbf16>
    %cst_29 = arith.constant dense<0.000000e+00> : vector<8x128xf32>
    %39 = tpu.matmul %37, %38, %cst_29 {dimension_numbers = #tpu.dot_dimension_numbers<[1], [1], [0], [0], [0, 0, 1, 0], [], []>} : vector<8x16xbf16>, vector<128x16xbf16>, vector<8x128xf32> -> vector<8x128xf32>
    %40 = vector.broadcast %4 : vector<1x1xf32> to vector<8x128xf32>
    %41 = arith.addf %39, %40 : vector<8x128xf32>
    %c0_30 = arith.constant 0 : index
    %c0_31 = arith.constant 0 : index
    %42 = vector.load %arg10[%c0_30, %c0_31] : memref<8x128xf32, #tpu.memory_space<vmem>>, vector<8x128xf32>
    tpu.vector_store %arg10[%c0_30, %c0_31], %41 {strides = array<i32>} : memref<8x128xf32, #tpu.memory_space<vmem>>, vector<8x128xf32>,
    return
  }
  func.func @transform_0(%arg0: i32) -> (i32, i32) {
    %c0_i32 = arith.constant 0 : i32
    %c0_i32_0 = arith.constant 0 : i32
    return %arg0, %c0_i32 : i32, i32
  }
  func.func @transform_1(%arg0: i32) -> (i32, i32) {
    %c0_i32 = arith.constant 0 : i32
    %c0_i32_0 = arith.constant 0 : i32
    return %arg0, %c0_i32 : i32, i32
  }
  func.func @transform_2(%arg0: i32) -> (i32, i32) {
    %c0_i32 = arith.constant 0 : i32
    %c0_i32_0 = arith.constant 0 : i32
    %c0_i32_1 = arith.constant 0 : i32
    return %c0_i32, %c0_i32_0 : i32, i32
  }
  func.func @transform_3(%arg0: i32) -> (i32, i32) {
    %c0_i32 = arith.constant 0 : i32
    %c0_i32_0 = arith.constant 0 : i32
    %c0_i32_1 = arith.constant 0 : i32
    return %c0_i32, %c0_i32_0 : i32, i32
  }
  func.func @transform_4(%arg0: i32) -> (i32, i32) {
    %c0_i32 = arith.constant 0 : i32
    %c0_i32_0 = arith.constant 0 : i32
    %c0_i32_1 = arith.constant 0 : i32
    return %c0_i32, %c0_i32_0 : i32, i32
  }
  func.func @transform_5(%arg0: i32) -> (i32, i32) {
    %c0_i32 = arith.constant 0 : i32
    %c0_i32_0 = arith.constant 0 : i32
    %c0_i32_1 = arith.constant 0 : i32
    return %c0_i32, %c0_i32_0 : i32, i32
  }
  func.func @transform_6(%arg0: i32) -> (i32, i32) {
    %c0_i32 = arith.constant 0 : i32
    %c0_i32_0 = arith.constant 0 : i32
    %c0_i32_1 = arith.constant 0 : i32
    return %c0_i32, %c0_i32_0 : i32, i32
  }
  func.func @transform_7(%arg0: i32) -> (i32, i32) {
    %c0_i32 = arith.constant 0 : i32
    %c0_i32_0 = arith.constant 0 : i32
    %c0_i32_1 = arith.constant 0 : i32
    return %c0_i32, %c0_i32_0 : i32, i32
  }
  func.func @transform_8(%arg0: i32) -> (i32, i32) {
    %c0_i32 = arith.constant 0 : i32
    %c0_i32_0 = arith.constant 0 : i32
    %c0_i32_1 = arith.constant 0 : i32
    return %c0_i32, %c0_i32_0 : i32, i32
  }
  func.func @transform_9(%arg0: i32) -> (i32, i32) {
    %c0_i32 = arith.constant 0 : i32
    %c0_i32_0 = arith.constant 0 : i32
    return %c0_i32, %arg0 : i32, i32
  }
}

</mosaic_0001>

<bundles_post_ra>
// kernel: tpu_custom_call.1
= control target key start
LH: loop header
LB: loop body
LE: loop exit
PB: predicated region body
PF: predicated region fallthrough
CT: control target
= control target key end

     0   :  { %14 = vsyncpa [#allocation3], 0  ;;  %s1499_s0 = inlined_call_operand.vmem [shape: bf16[128,128], index: 0, kind: input, shape index: {}]   ;;  %s1500_s1 = inlined_call_operand.vmem [shape: bf16[128,128], index: 1, kind: input, shape index: {}]   ;;  %s1501_s2 = inlined_call_operand.hbm [shape: bf16[128,128], index: 2, kind: input, shape index: {}]   ;;  %s1502_s3 = inlined_call_operand.hbm [shape: bf16[128,128], index: 3, kind: input, shape index: {}]   ;;  %s1503_s4 = inlined_call_operand.vmem [shape: bf16[128,64], index: 4, kind: input, shape index: {}]   ;;  %s1504_s5 = inlined_call_operand.vmem [shape: bf16[64,32], index: 5, kind: input, shape index: {}]   ;;  %s1505_s6 = inlined_call_operand.vmem [shape: bf16[32,16], index: 6, kind: input, shape index: {}]   ;;  %s1506_s7 = inlined_call_operand.vmem [shape: bf16[8,16], index: 7, kind: input, shape index: {}]   ;;  %s1507_s8 = inlined_call_operand.vmem [shape: f32[8,128], index: 8, kind: input, shape index: {}]   ;;  %s1508_s9 = inlined_call_operand.hbm [shape: f32[8,128], index: 9, kind: output, shape index: {}]  }
   0x1   :  { %15 = vsyncpa [#allocation6], 0 }
   0x2   :  { %16 = vsyncpa [#allocation4], 0  ;;  %s25_s11 = sshll.u32 %s1501_s2, 4  ;;  %s1263_s12 = smov [#allocation2]   ;;  %s26_s11 = int_to_ptr.hbm [resolvable:$true] %s25_s11 }
   0x3   :  { %s27_s13 = sshll.u32 %s1263_s12, 4  ;;  %s38_s16 = sshll.u32 %s1502_s3, 4  ;;  %s28_s13 = int_to_ptr.vmem [resolvable:$true] %s27_s13  ;;  %s39_s16 = int_to_ptr.hbm [resolvable:$true] %s38_s16 }
   0x4   :  { %s1264_s17 = smov 64   ;;  %s1265_s18 = smov 4  }
   0x5   :  { %33 = dma.hbm_to_vmem [thread:$0]  %s26_s11, 1024, %s28_s13, [#allocation3], %s1264_s17, %s1264_s17, %s1265_s18  }
   0x6   :  { %s1266_s19 = smov [#allocation5]  }
   0x7   :  { %s40_s20 = sshll.u32 %s1266_s19, 4  ;;  %s41_s20 = int_to_ptr.vmem [resolvable:$true] %s40_s20 }
   0x8   :  { %46 = dma.hbm_to_vmem [thread:$0]  %s39_s16, 1024, %s41_s20, [#allocation6], %s1264_s17, %s1264_s17, %s1265_s18  }
   0x9   :  { %1257 = dma.done.wait [#allocation3], 1024  }
   0xa   :  { %1258 = vsyncadd [#allocation3], 4294966272 }
   0xb   :  { %1259 = dma.done.wait [#allocation6], 1024  }
   0xc   :  { %1260 = vsyncadd [#allocation6], 4294966272  ;;  %v1147_v0 = vld [vmem:[#allocation5 + $0x38] sm:$0xff]  ;;  %v1146_v2 = vld [vmem:[#allocation5 + $0x30] sm:$0xff]  ;;  %vm637_vm0 = vcmask 523264   ;;  %vm752_vm1 = vcmask 261120  }
   0xd   :  { %v1131_v1 = vld [vmem:[#allocation2 + $0x38] sm:$0xff]  ;;  %231 = vmatpush.bf16.msra.mxu0 %v1147_v0  ;;  %v1130_v3 = vld [vmem:[#allocation2 + $0x30] sm:$0xff]  ;;  %v1145_v4 = vld [vmem:[#allocation5 + $0x28] sm:$0xff]  ;;  %vm855_vm2 = vcmask 130048   ;;  %s904_s3 = sshll.u32 %s1508_s9, 4  ;;  %s905_s3 = int_to_ptr.hbm [resolvable:$true] %s904_s3 }
   0xe   :  { %376 = vmatpush.bf16.msra.mxu1 %v1131_v1  ;;  %1162 = vmatpush.bf16.msra.mxu2 %v1131_v1  ;;  %v1129_v5 = vld [vmem:[#allocation2 + $0x28] sm:$0xff]  ;;  %v1144_v6 = vld [vmem:[#allocation5 + $0x20] sm:$0xff]  ;;  %v1143_v8 = vld [vmem:[#allocation5 + $0x18] sm:$0xff] }
   0xf   :  { %v1128_v7 = vld [vmem:[#allocation2 + $0x20] sm:$0xff]  ;;  %v1127_v9 = vld [vmem:[#allocation2 + $0x18] sm:$0xff]  ;;  %v1142_v10 = vld [vmem:[#allocation5 + $0x10] sm:$0xff] }
  0x10   :  { %v1126_v11 = vld [vmem:[#allocation2 + $0x10] sm:$0xff]  ;;  %v1141_v12 = vld [vmem:[#allocation5 + $0x8] sm:$0xff]  ;;  %v1140_v14 = vld [vmem:[#allocation5] sm:$0xff] }
  0x11   :  { %232 = vmatpush.bf16.msra.mxu0 %v1146_v2  ;;  %v1125_v13 = vld [vmem:[#allocation2 + $0x8] sm:$0xff]  ;;  %v1124_v15 = vld [vmem:[#allocation2] sm:$0xff]  ;;  %v1134_v20 = vld [vmem:[%s1500_s1 + $0x10] sm:$0xff] }
  0x12   :  { %377 = vmatpush.bf16.msra.mxu1 %v1130_v3  ;;  %1163 = vmatpush.bf16.msra.mxu2 %v1130_v3  ;;  %v1132_v16 = vld [vmem:[%s1500_s1] sm:$0xff]  ;;  %v1133_v18 = vld [vmem:[%s1500_s1 + $0x8] sm:$0xff]  ;;  %v1118_v21 = vld [vmem:[%s1499_s0 + $0x10] sm:$0xff] }
  0x13   :  { %v1116_v17 = vld [vmem:[%s1499_s0] sm:$0xff]  ;;  %v1117_v19 = vld [vmem:[%s1499_s0 + $0x8] sm:$0xff]  ;;  %v1135_v23 = vld [vmem:[%s1500_s1 + $0x18] sm:$0xff] }
  0x14   :  { %v1121_v22 = vld [vmem:[%s1499_s0 + $0x28] sm:$0xff]  ;;  %v1119_v24 = vld [vmem:[%s1499_s0 + $0x18] sm:$0xff]  ;;  %v1122_v25 = vld [vmem:[%s1499_s0 + $0x30] sm:$0xff] }
  0x15   :  { %233 = vmatpush.bf16.msra.mxu0 %v1145_v4  ;;  %v1136_v26 = vld [vmem:[%s1500_s1 + $0x20] sm:$0xff]  ;;  %v1123_v28 = vld [vmem:[%s1499_s0 + $0x38] sm:$0xff]  ;;  %v1137_v30 = vld [vmem:[%s1500_s1 + $0x28] sm:$0xff] }
  0x16   :  { %378 = vmatpush.bf16.msra.mxu1 %v1129_v5  ;;  %1164 = vmatpush.bf16.msra.mxu2 %v1129_v5  ;;  %v1120_v27 = vld [vmem:[%s1499_s0 + $0x20] sm:$0xff]  ;;  %v1155_v29 = vld [vmem:[%s1503_s4 + $0x38] sm:$0xff]  ;;  %v1154_v31 = vld [vmem:[%s1503_s4 + $0x30] sm:$0xff] }
  0x17   :  { %v1153_v32 = vld [vmem:[%s1503_s4 + $0x28] sm:$0xff]  ;;  %v1152_v33 = vld [vmem:[%s1503_s4 + $0x20] sm:$0xff]  ;;  %v1138_v34 = vld [vmem:[%s1500_s1 + $0x30] sm:$0xff] }
  0x18   :  { %v1151_v35 = vld [vmem:[%s1503_s4 + $0x18] sm:$0xff]  ;;  %v1150_v36 = vld [vmem:[%s1503_s4 + $0x10] sm:$0xff]  ;;  %v1149_v37 = vld [vmem:[%s1503_s4 + $0x8] sm:$0xff] }
  0x19   :  { %234 = vmatpush.bf16.msra.mxu0 %v1144_v6  ;;  %v1148_v38 = vld [vmem:[%s1503_s4] sm:$0xff]  ;;  %v1139_v39 = vld [vmem:[%s1500_s1 + $0x38] sm:$0xff] }
  0x1a   :  { %379 = vmatpush.bf16.msra.mxu1 %v1128_v7  ;;  %1165 = vmatpush.bf16.msra.mxu2 %v1128_v7  ;;  %v1399_v43 = vld [vmem:[%s1507_s8] ss:$0 sm:$0xff] }
  0x1d   :  { %235 = vmatpush.bf16.msra.mxu0 %v1143_v8 }
  0x1e   :  { %380 = vmatpush.bf16.msra.mxu1 %v1127_v9  ;;  %1166 = vmatpush.bf16.msra.mxu2 %v1127_v9 }
  0x21   :  { %236 = vmatpush.bf16.msra.mxu0 %v1142_v10 }
  0x22   :  { %381 = vmatpush.bf16.msra.mxu1 %v1126_v11  ;;  %1167 = vmatpush.bf16.msra.mxu2 %v1126_v11 }
  0x25   :  { %237 = vmatpush.bf16.msra.mxu0 %v1141_v12 }
  0x26   :  { %382 = vmatpush.bf16.msra.mxu1 %v1125_v13  ;;  %1168 = vmatpush.bf16.msra.mxu2 %v1125_v13 }
  0x29   :  { %238 = vmatpush.bf16.msra.mxu0 %v1140_v14 }
  0x2a   :  { %383 = vmatpush.bf16.msra.mxu1 %v1124_v15  ;;  %1169 = vmatpush.bf16.msra.mxu2 %v1124_v15 }
  0x2c   :  { %239 = vmatmul.bf16.vlgmr.msra.gmra.mxu0 %v1132_v16 }
  0x2d   :  { %384 = vmatmul.bf16.vlgmr.msra.gmra.mxu1 %v1116_v17  ;;  %409 = vmatmul.bf16.vlgmr.msra.gmra.mxu2 %v1121_v22 }
  0x2e   :  { %531 = vmatpush.bf16.msrb.mxu2 %v1155_v29 }
  0x32   :  { %532 = vmatpush.bf16.msrb.mxu2 %v1154_v31 }
  0x36   :  { %533 = vmatpush.bf16.msrb.mxu2 %v1153_v32 }
  0x3a   :  { %534 = vmatpush.bf16.msrb.mxu2 %v1152_v33 }
  0x3c   :  { %244 = vmatmul.bf16.gmra.mxu0 %v1133_v18 }
  0x3d   :  { %389 = vmatmul.bf16.gmra.mxu1 %v1117_v19  ;;  %414 = vmatmul.bf16.gmra.mxu2 %v1122_v25 }
  0x3e   :  { %535 = vmatpush.bf16.msrb.mxu2 %v1151_v35 }
  0x42   :  { %536 = vmatpush.bf16.msrb.mxu2 %v1150_v36 }
  0x46   :  { %537 = vmatpush.bf16.msrb.mxu2 %v1149_v37 }
  0x4a   :  { %538 = vmatpush.bf16.msrb.mxu2 %v1148_v38 }
  0x4c   :  { %249 = vmatmul.bf16.gmra.mxu0 %v1134_v20 }
  0x4d   :  { %394 = vmatmul.bf16.gmra.mxu1 %v1118_v21  ;;  %419 = vmatmul.bf16.gmra.mxu2 %v1123_v28 }
  0x5c   :  { %254 = vmatmul.bf16.gmra.mxu0 %v1135_v23 }
  0x5d   :  { %399 = vmatmul.bf16.gmra.mxu1 %v1119_v24 }
  0x6c   :  { %259 = vmatmul.bf16.gmra.mxu0 %v1136_v26 }
  0x6d   :  { %404 = vmatmul.bf16.gmra.mxu1 %v1120_v27 }
  0x7c   :  { %264 = vmatmul.bf16.gmra.mxu0 %v1137_v30 }
  0x8c   :  { %269 = vmatmul.bf16.gmra.mxu0 %v1138_v34 }
  0x9c   :  { %274 = vmatmul.bf16.gmra.mxu0 %v1139_v39 }
  0xa9   :  { %v240_v40 = vpop.f32.mrf.mxu0 }
  0xaa   :  { %v385_v41 = vpop.f32.mrf.mxu1 }
  0xab   :  { %v386_v42 = vadd.f32 %v385_v41, %v240_v40 }
  0xad   :  { %v426_v46 = vadd.f32 %v1399_v43, %v386_v42 }
  0xaf   :  { %v442_v49 = vmax.f32 %v426_v46, 0.0 }
  0xb0   :  { %v410_v24 = vpop.f32.mrf.mxu2 }
  0xb1   :  { %v242_v44 = vpop.f32.mrf.mxu0 }
  0xb2   :  { %v387_v45 = vpop.f32.mrf.mxu1 }
  0xb3   :  { %v388_v47 = vadd.f32 %v387_v45, %v242_v44 }
  0xb5   :  { %v427_v48 = vadd.f32 %v1399_v43, %v388_v47 }
  0xb7   :  { %v443_v50 = vmax.f32 %v427_v48, 0.0 }
  0xb8   :  { %v412_v34 = vpop.f32.mrf.mxu2 }
  0xb9   :  { %v458_v51 = vpack.c.bf16 %v443_v50, %v442_v49  ;;  %v245_v52 = vpop.f32.mrf.mxu0 }
  0xba   :  { %v390_v53 = vpop.f32.mrf.mxu1 }
  0xbb   :  { %539 = vmatmul.bf16.vlgmr.msrb.gmra.mxu2 %v458_v51  ;;  %v391_v54 = vadd.f32 %v390_v53, %v245_v52 }
  0xbd   :  { %v428_v57 = vadd.f32 %v1399_v43, %v391_v54 }
  0xbf   :  { %v444_v60 = vmax.f32 %v428_v57, 0.0  ;;  %v1159_v57 = vld [vmem:[%s1504_s5 + $0x18] sm:$0xff] }
  0xc0   :  { %v415_v39 = vpop.f32.mrf.mxu2  ;;  %666 = vmatpush.bf16.msrb.mxu1 %v1159_v57  ;;  %1170 = vmatpush.bf16.msra.mxu3 %v1159_v57  ;;  %v1161_v57 = vld [vmem:[%s1505_s6 + $0x8] sm:$0xff] }
  0xc1   :  { %v247_v55 = vpop.f32.mrf.mxu0 }
  0xc2   :  { %v392_v56 = vpop.f32.mrf.mxu1 }
  0xc3   :  { %v393_v58 = vadd.f32 %v392_v56, %v247_v55 }
  0xc5   :  { %v429_v59 = vadd.f32 %v1399_v43, %v393_v58 }
  0xc7   :  { %v445_v61 = vmax.f32 %v429_v59, 0.0  ;;  %v1158_v59 = vld [vmem:[%s1504_s5 + $0x10] sm:$0xff] }
  0xc8   :  { %v417_v46 = vpop.f32.mrf.mxu2  ;;  %667 = vmatpush.bf16.msrb.mxu1 %v1158_v59  ;;  %1171 = vmatpush.bf16.msra.mxu3 %v1158_v59 }
  0xc9   :  { %v459_v62 = vpack.c.bf16 %v445_v61, %v444_v60  ;;  %v250_v63 = vpop.f32.mrf.mxu0 }
  0xca   :  { %v395_v0 = vpop.f32.mrf.mxu1 }
  0xcb   :  { %544 = vmatmul.bf16.gmra.mxu2 %v459_v62  ;;  %v396_v1 = vadd.f32 %v395_v0, %v250_v63  ;;  %v1157_v0 = vld [vmem:[%s1504_s5 + $0x8] sm:$0xff] }
  0xcc   :  { %668 = vmatpush.bf16.msrb.mxu1 %v1157_v0  ;;  %1172 = vmatpush.bf16.msra.mxu3 %v1157_v0 }
  0xcd   :  { %v430_v4 = vadd.f32 %v1399_v43, %v396_v1 }
  0xcf   :  { %v446_v7 = vmax.f32 %v430_v4, 0.0  ;;  %v1156_v4 = vld [vmem:[%s1504_s5] sm:$0xff] }
  0xd0   :  { %v420_v54 = vpop.f32.mrf.mxu2  ;;  %669 = vmatpush.bf16.msrb.mxu1 %v1156_v4  ;;  %1173 = vmatpush.bf16.msra.mxu3 %v1156_v4 }
  0xd1   :  { %v252_v2 = vpop.f32.mrf.mxu0 }
  0xd2   :  { %v397_v3 = vpop.f32.mrf.mxu1 }
  0xd3   :  { %v398_v5 = vadd.f32 %v397_v3, %v252_v2 }
  0xd4   :  { %783 = vmatpush.bf16.msrb.mxu3 %v1161_v57 }
  0xd5   :  { %v431_v6 = vadd.f32 %v1399_v43, %v398_v5 }
  0xd7   :  { %v447_v8 = vmax.f32 %v431_v6, 0.0 }
  0xd8   :  { %v422_v60 = vpop.f32.mrf.mxu2 }
  0xd9   :  { %v460_v9 = vpack.c.bf16 %v447_v8, %v446_v7  ;;  %v255_v10 = vpop.f32.mrf.mxu0  ;;  %v1432_v7 = vld [vmem:[%s1507_s8 + $0x1] ss:$0 sm:$0xff] }
  0xda   :  { %v400_v11 = vpop.f32.mrf.mxu1 }
  0xdb   :  { %549 = vmatmul.bf16.gmra.mxu2 %v460_v9  ;;  %v401_v12 = vadd.f32 %v400_v11, %v255_v10 }
  0xdd   :  { %v432_v15 = vadd.f32 %v1399_v43, %v401_v12 }
  0xdf   :  { %v448_v18 = vmax.f32 %v432_v15, 0.0 }
  0xe1   :  { %v257_v13 = vpop.f32.mrf.mxu0 }
  0xe2   :  { %v402_v14 = vpop.f32.mrf.mxu1 }
  0xe3   :  { %v403_v16 = vadd.f32 %v402_v14, %v257_v13 }
  0xe5   :  { %v433_v17 = vadd.f32 %v1399_v43, %v403_v16 }
  0xe7   :  { %v449_v19 = vmax.f32 %v433_v17, 0.0 }
  0xe9   :  { %v461_v20 = vpack.c.bf16 %v449_v19, %v448_v18  ;;  %v260_v21 = vpop.f32.mrf.mxu0 }
  0xea   :  { %v405_v22 = vpop.f32.mrf.mxu1 }
  0xeb   :  { %554 = vmatmul.bf16.gmra.mxu2 %v461_v20  ;;  %v406_v23 = vadd.f32 %v405_v22, %v260_v21 }
  0xed   :  { %v434_v27 = vadd.f32 %v1399_v43, %v406_v23 }
  0xef   :  { %v450_v30 = vmax.f32 %v434_v27, 0.0 }
  0xf1   :  { %v262_v25 = vpop.f32.mrf.mxu0 }
  0xf2   :  { %v407_v26 = vpop.f32.mrf.mxu1 }
  0xf3   :  { %v408_v28 = vadd.f32 %v407_v26, %v262_v25 }
  0xf5   :  { %v435_v29 = vadd.f32 %v1399_v43, %v408_v28 }
  0xf7   :  { %v451_v31 = vmax.f32 %v435_v29, 0.0 }
  0xf9   :  { %v462_v32 = vpack.c.bf16 %v451_v31, %v450_v30  ;;  %v265_v33 = vpop.f32.mrf.mxu0 }
  0xfa   :  { %v411_v35 = vadd.f32 %v410_v24, %v265_v33 }
  0xfb   :  { %559 = vmatmul.bf16.gmra.mxu2 %v462_v32 }
  0xfc   :  { %v436_v37 = vadd.f32 %v1399_v43, %v411_v35 }
  0xfe   :  { %v452_v41 = vmax.f32 %v436_v37, 0.0 }
 0x101   :  { %v267_v36 = vpop.f32.mrf.mxu0 }
 0x102   :  { %v413_v38 = vadd.f32 %v412_v34, %v267_v36 }
 0x104   :  { %v437_v40 = vadd.f32 %v1399_v43, %v413_v38 }
 0x106   :  { %v453_v42 = vmax.f32 %v437_v40, 0.0 }
 0x108   :  { %v463_v44 = vpack.c.bf16 %v453_v42, %v452_v41 }
 0x109   :  { %v270_v45 = vpop.f32.mrf.mxu0 }
 0x10a   :  { %v416_v47 = vadd.f32 %v415_v39, %v270_v45 }
 0x10b   :  { %564 = vmatmul.bf16.gmra.mxu2 %v463_v44 }
 0x10c   :  { %v438_v49 = vadd.f32 %v1399_v43, %v416_v47 }
 0x10e   :  { %v454_v52 = vmax.f32 %v438_v49, 0.0 }
 0x111   :  { %v272_v48 = vpop.f32.mrf.mxu0 }
 0x112   :  { %v418_v50 = vadd.f32 %v417_v46, %v272_v48 }
 0x114   :  { %v439_v51 = vadd.f32 %v1399_v43, %v418_v50 }
 0x116   :  { %v455_v53 = vmax.f32 %v439_v51, 0.0 }
 0x118   :  { %v464_v55 = vpack.c.bf16 %v455_v53, %v454_v52 }
 0x119   :  { %v275_v56 = vpop.f32.mrf.mxu0 }
 0x11a   :  { %v421_v58 = vadd.f32 %v420_v54, %v275_v56 }
 0x11b   :  { %569 = vmatmul.bf16.gmra.mxu2 %v464_v55 }
 0x11c   :  { %v440_v62 = vadd.f32 %v1399_v43, %v421_v58  ;;  %v1160_v58 = vld [vmem:[%s1505_s6] sm:$0xff] }
 0x11d   :  { %784 = vmatpush.bf16.msrb.mxu3 %v1160_v58 }
 0x11e   :  { %v456_v2 = vmax.f32 %v440_v62, 0.0 }
 0x121   :  { %v277_v61 = vpop.f32.mrf.mxu0 }
 0x122   :  { %v423_v63 = vadd.f32 %v422_v60, %v277_v61 }
 0x124   :  { %v441_v1 = vadd.f32 %v1399_v43, %v423_v63 }
 0x126   :  { %v457_v3 = vmax.f32 %v441_v1, 0.0 }
 0x128   :  { %v465_v5 = vpack.c.bf16 %v457_v3, %v456_v2  ;;  %v1183_v2 = vld [vmem:[%s1507_s8 + $0x2] ss:$0 sm:$0xff] }
 0x12b   :  { %574 = vmatmul.bf16.gmra.mxu2 %v465_v5 }
 0x13e   :  { %v540_v6 = vpop.f32.mrf.mxu2 }
 0x13f   :  { %v541_v43 = vadd.f32 %v1432_v7, %v540_v6 }
 0x141   :  { %v580_v10 = vmax.f32 %v541_v43, 0.0 }
 0x146   :  { %v542_v8 = vpop.f32.mrf.mxu2 }
 0x147   :  { %v543_v9 = vadd.f32 %v1432_v7, %v542_v8 }
 0x149   :  { %v581_v11 = vmax.f32 %v543_v9, 0.0 }
 0x14b   :  { %v596_v12 = vpack.c.bf16 %v581_v11, %v580_v10 }
 0x14d   :  { %1091 = vmatmul.msk.bf16.vlgmr.msrb.gmra.mxu1 %vm637_vm0, %v596_v12 }
 0x14e   :  { %v545_v13 = vpop.f32.mrf.mxu2 }
 0x14f   :  { %v546_v14 = vadd.f32 %v1432_v7, %v545_v13 }
 0x151   :  { %v582_v17 = vmax.f32 %v546_v14, 0.0 }
 0x156   :  { %v547_v15 = vpop.f32.mrf.mxu2 }
 0x157   :  { %v548_v16 = vadd.f32 %v1432_v7, %v547_v15 }
 0x159   :  { %v583_v18 = vmax.f32 %v548_v16, 0.0 }
 0x15b   :  { %v597_v19 = vpack.c.bf16 %v583_v18, %v582_v17 }
 0x15d   :  { %1092 = vmatmul.msk.bf16.gmra.mxu1 %vm637_vm0, %v597_v19 }
 0x15e   :  { %v550_v20 = vpop.f32.mrf.mxu2 }
 0x15f   :  { %v551_v21 = vadd.f32 %v1432_v7, %v550_v20 }
 0x161   :  { %v584_v24 = vmax.f32 %v551_v21, 0.0 }
 0x166   :  { %v552_v22 = vpop.f32.mrf.mxu2 }
 0x167   :  { %v553_v23 = vadd.f32 %v1432_v7, %v552_v22 }
 0x169   :  { %v585_v25 = vmax.f32 %v553_v23, 0.0 }
 0x16b   :  { %v598_v26 = vpack.c.bf16 %v585_v25, %v584_v24 }
 0x16d   :  { %1093 = vmatmul.msk.bf16.gmra.mxu1 %vm637_vm0, %v598_v26 }
 0x16e   :  { %v555_v27 = vpop.f32.mrf.mxu2 }
 0x16f   :  { %v556_v28 = vadd.f32 %v1432_v7, %v555_v27 }
 0x171   :  { %v586_v31 = vmax.f32 %v556_v28, 0.0 }
 0x176   :  { %v557_v29 = vpop.f32.mrf.mxu2 }
 0x177   :  { %v558_v30 = vadd.f32 %v1432_v7, %v557_v29 }
 0x179   :  { %v587_v32 = vmax.f32 %v558_v30, 0.0 }
 0x17b   :  { %v599_v33 = vpack.c.bf16 %v587_v32, %v586_v31 }
 0x17d   :  { %1094 = vmatmul.msk.bf16.gmra.mxu1 %vm637_vm0, %v599_v33 }
 0x17e   :  { %v560_v34 = vpop.f32.mrf.mxu2 }
 0x17f   :  { %v561_v35 = vadd.f32 %v1432_v7, %v560_v34 }
 0x181   :  { %v588_v38 = vmax.f32 %v561_v35, 0.0 }
 0x186   :  { %v562_v36 = vpop.f32.mrf.mxu2 }
 0x187   :  { %v563_v37 = vadd.f32 %v1432_v7, %v562_v36 }
 0x189   :  { %v589_v39 = vmax.f32 %v563_v37, 0.0 }
 0x18b   :  { %v600_v40 = vpack.c.bf16 %v589_v39, %v588_v38 }
 0x18d   :  { %1095 = vmatmul.msk.bf16.gmra.mxu1 %vm637_vm0, %v600_v40 }
 0x18e   :  { %v565_v41 = vpop.f32.mrf.mxu2 }
 0x18f   :  { %v566_v42 = vadd.f32 %v1432_v7, %v565_v41 }
 0x191   :  { %v590_v46 = vmax.f32 %v566_v42, 0.0 }
 0x196   :  { %v567_v44 = vpop.f32.mrf.mxu2 }
 0x197   :  { %v568_v45 = vadd.f32 %v1432_v7, %v567_v44 }
 0x199   :  { %v591_v47 = vmax.f32 %v568_v45, 0.0 }
 0x19b   :  { %v601_v48 = vpack.c.bf16 %v591_v47, %v590_v46 }
 0x19d   :  { %1096 = vmatmul.msk.bf16.vlgmr.msra.gmra.mxu3 %vm637_vm0, %v601_v48 }
 0x19e   :  { %v570_v49 = vpop.f32.mrf.mxu2 }
 0x19f   :  { %v571_v50 = vadd.f32 %v1432_v7, %v570_v49 }
 0x1a1   :  { %v592_v53 = vmax.f32 %v571_v50, 0.0 }
 0x1a6   :  { %v572_v51 = vpop.f32.mrf.mxu2 }
 0x1a7   :  { %v573_v52 = vadd.f32 %v1432_v7, %v572_v51 }
 0x1a9   :  { %v593_v54 = vmax.f32 %v573_v52, 0.0 }
 0x1ab   :  { %v602_v55 = vpack.c.bf16 %v593_v54, %v592_v53 }
 0x1ad   :  { %1097 = vmatmul.msk.bf16.gmra.mxu3 %vm637_vm0, %v602_v55 }
 0x1ae   :  { %v575_v56 = vpop.f32.mrf.mxu2 }
 0x1af   :  { %v576_v59 = vadd.f32 %v1432_v7, %v575_v56 }
 0x1b1   :  { %v594_v62 = vmax.f32 %v576_v59, 0.0  ;;  %v1184_v59 = vld [vmem:[%s1507_s8 + $0x3] ss:$0 sm:$0xff] }
 0x1b6   :  { %v577_v60 = vpop.f32.mrf.mxu2 }
 0x1b7   :  { %v578_v61 = vadd.f32 %v1432_v7, %v577_v60 }
 0x1b9   :  { %v595_v63 = vmax.f32 %v578_v61, 0.0 }
 0x1bb   :  { %v603_v0 = vpack.c.bf16 %v595_v63, %v594_v62 }
 0x1bd   :  { %1098 = vmatmul.msk.bf16.gmra.mxu3 %vm637_vm0, %v603_v0 }
 0x1ca   :  { %v671_v1 = vpop.f32.mrf.mxu1 }
 0x1cb   :  { %v672_v3 = vadd.f32 %v1183_v2, %v671_v1 }
 0x1cd   :  { %v711_v6 = vmax.f32 %v672_v3, 0.0 }
 0x1d2   :  { %v673_v4 = vpop.f32.mrf.mxu1 }
 0x1d3   :  { %v674_v5 = vadd.f32 %v1183_v2, %v673_v4 }
 0x1d5   :  { %v712_v43 = vmax.f32 %v674_v5, 0.0 }
 0x1d7   :  { %v727_v8 = vpack.c.bf16 %v712_v43, %v711_v6 }
 0x1d9   :  { %1107 = vmatmul.msk.bf16.vlgmr.msrb.gmra.mxu3 %vm752_vm1, %v727_v8 }
 0x1da   :  { %v676_v7 = vpop.f32.mrf.mxu1 }
 0x1db   :  { %v677_v9 = vadd.f32 %v1183_v2, %v676_v7 }
 0x1dd   :  { %v713_v12 = vmax.f32 %v677_v9, 0.0 }
 0x1e2   :  { %v678_v10 = vpop.f32.mrf.mxu1 }
 0x1e3   :  { %v679_v11 = vadd.f32 %v1183_v2, %v678_v10 }
 0x1e5   :  { %v714_v13 = vmax.f32 %v679_v11, 0.0 }
 0x1e7   :  { %v728_v14 = vpack.c.bf16 %v714_v13, %v713_v12 }
 0x1e9   :  { %1108 = vmatmul.msk.bf16.gmra.mxu3 %vm752_vm1, %v728_v14 }
 0x1ea   :  { %v681_v15 = vpop.f32.mrf.mxu1 }
 0x1eb   :  { %v682_v16 = vadd.f32 %v1183_v2, %v681_v15 }
 0x1ed   :  { %v715_v19 = vmax.f32 %v682_v16, 0.0 }
 0x1f2   :  { %v683_v17 = vpop.f32.mrf.mxu1 }
 0x1f3   :  { %v684_v18 = vadd.f32 %v1183_v2, %v683_v17 }
 0x1f5   :  { %v716_v20 = vmax.f32 %v684_v18, 0.0 }
 0x1f7   :  { %v729_v21 = vpack.c.bf16 %v716_v20, %v715_v19 }
 0x1f9   :  { %1109 = vmatmul.msk.bf16.gmra.mxu3 %vm752_vm1, %v729_v21 }
 0x1fa   :  { %v686_v22 = vpop.f32.mrf.mxu1 }
 0x1fb   :  { %v687_v23 = vadd.f32 %v1183_v2, %v686_v22 }
 0x1fd   :  { %v717_v26 = vmax.f32 %v687_v23, 0.0 }
 0x202   :  { %v688_v24 = vpop.f32.mrf.mxu1 }
 0x203   :  { %v689_v25 = vadd.f32 %v1183_v2, %v688_v24 }
 0x205   :  { %v718_v27 = vmax.f32 %v689_v25, 0.0 }
 0x207   :  { %v730_v28 = vpack.c.bf16 %v718_v27, %v717_v26 }
 0x209   :  { %1110 = vmatmul.msk.bf16.gmra.mxu3 %vm752_vm1, %v730_v28 }
 0x20a   :  { %v691_v29 = vpop.f32.mrf.mxu1 }
 0x20b   :  { %v692_v30 = vadd.f32 %v1183_v2, %v691_v29 }
 0x20d   :  { %v719_v33 = vmax.f32 %v692_v30, 0.0 }
 0x212   :  { %v693_v31 = vpop.f32.mrf.mxu1 }
 0x213   :  { %v694_v32 = vadd.f32 %v1183_v2, %v693_v31 }
 0x215   :  { %v720_v34 = vmax.f32 %v694_v32, 0.0 }
 0x217   :  { %v731_v35 = vpack.c.bf16 %v720_v34, %v719_v33 }
 0x219   :  { %1111 = vmatmul.msk.bf16.gmra.mxu3 %vm752_vm1, %v731_v35 }
 0x220   :  { %v696_v36 = vpop.f32.mrf.mxu3 }
 0x221   :  { %v697_v37 = vadd.f32 %v1183_v2, %v696_v36 }
 0x223   :  { %v721_v40 = vmax.f32 %v697_v37, 0.0 }
 0x228   :  { %v698_v38 = vpop.f32.mrf.mxu3 }
 0x229   :  { %v699_v39 = vadd.f32 %v1183_v2, %v698_v38 }
 0x22b   :  { %v722_v41 = vmax.f32 %v699_v39, 0.0 }
 0x22d   :  { %v732_v42 = vpack.c.bf16 %v722_v41, %v721_v40 }
 0x22f   :  { %1112 = vmatmul.msk.bf16.gmra.mxu3 %vm752_vm1, %v732_v42 }
 0x230   :  { %v701_v44 = vpop.f32.mrf.mxu3 }
 0x231   :  { %v702_v45 = vadd.f32 %v1183_v2, %v701_v44 }
 0x233   :  { %v723_v48 = vmax.f32 %v702_v45, 0.0 }
 0x238   :  { %v703_v46 = vpop.f32.mrf.mxu3 }
 0x239   :  { %v704_v47 = vadd.f32 %v1183_v2, %v703_v46 }
 0x23b   :  { %v724_v49 = vmax.f32 %v704_v47, 0.0 }
 0x23d   :  { %v733_v50 = vpack.c.bf16 %v724_v49, %v723_v48 }
 0x23f   :  { %1113 = vmatmul.msk.bf16.gmra.mxu3 %vm752_vm1, %v733_v50 }
 0x240   :  { %v706_v51 = vpop.f32.mrf.mxu3 }
 0x241   :  { %v707_v52 = vadd.f32 %v1183_v2, %v706_v51 }
 0x243   :  { %v725_v55 = vmax.f32 %v707_v52, 0.0 }
 0x248   :  { %v708_v53 = vpop.f32.mrf.mxu3 }
 0x249   :  { %v709_v54 = vadd.f32 %v1183_v2, %v708_v53 }
 0x24b   :  { %v726_v56 = vmax.f32 %v709_v54, 0.0 }
 0x24d   :  { %v734_v57 = vpack.c.bf16 %v726_v56, %v725_v55  ;;  %v70_v56 = vld [vmem:[%s1507_s8 + $0x4] sm:$0x1]  ;;  %s1267_s8 = smov [#allocation7]  }
 0x24e   :  { %1174 = vpush %v70_v56  ;;  %s902_s19 = sshll.u32 %s1267_s8, 4  ;;  %s903_s19 = int_to_ptr.vmem [resolvable:$true] %s902_s19 }
 0x24f   :  { %1114 = vmatmul.msk.bf16.gmra.mxu3 %vm752_vm1, %v734_v57 }
 0x25c   :  { %v786_v58 = vpop.f32.mrf.mxu3 }
 0x25d   :  { %v787_v60 = vadd.f32 %v1184_v59, %v786_v58 }
 0x25f   :  { %v826_v63 = vmax.f32 %v787_v60, 0.0  ;;  %v842_v60 = vld [vmem:[%s1506_s7] sm:$0xf] }
 0x264   :  { %v788_v61 = vpop.f32.mrf.mxu3 }
 0x265   :  { %v789_v62 = vadd.f32 %v1184_v59, %v788_v61 }
 0x267   :  { %v827_v0 = vmax.f32 %v789_v62, 0.0 }
 0x269   :  { %v1478_v1 = vpack.c.bf16 %v827_v0, %v826_v63 }
 0x26c   :  { %v791_v3 = vpop.f32.mrf.mxu3 }
 0x26d   :  { %v792_v4 = vadd.f32 %v1184_v59, %v791_v3 }
 0x26f   :  { %v828_v6 = vmax.f32 %v792_v4, 0.0 }
 0x274   :  { %v793_v2 = vpop.f32.mrf.mxu3 }
 0x275   :  { %v794_v5 = vadd.f32 %v1184_v59, %v793_v2 }
 0x277   :  { %v829_v43 = vmax.f32 %v794_v5, 0.0 }
 0x279   :  { %v844_v8 = vpack.c.bf16 %v829_v43, %v828_v6 }
 0x27b   :  { %v863_v58 = vsel %vm855_vm2, %v844_v8, 0 }
 0x27c   :  { %v796_v7 = vpop.f32.mrf.mxu3 }
 0x27d   :  { %v797_v9 = vadd.f32 %v1184_v59, %v796_v7 }
 0x27f   :  { %v830_v12 = vmax.f32 %v797_v9, 0.0  ;;  %s1175_s18 = spop %1174 }
 0x280   :  { %v853_v61 = vstv %s1175_s18 }
 0x284   :  { %v798_v10 = vpop.f32.mrf.mxu3 }
 0x285   :  { %v799_v11 = vadd.f32 %v1184_v59, %v798_v10 }
 0x287   :  { %v831_v13 = vmax.f32 %v799_v11, 0.0 }
 0x289   :  { %v845_v14 = vpack.c.bf16 %v831_v13, %v830_v12 }
 0x28b   :  { %v866_v57 = vsel %vm855_vm2, %v845_v14, 0 }
 0x28c   :  { %v801_v15 = vpop.f32.mrf.mxu3 }
 0x28d   :  { %v802_v16 = vadd.f32 %v1184_v59, %v801_v15 }
 0x28f   :  { %v832_v19 = vmax.f32 %v802_v16, 0.0 }
 0x294   :  { %v803_v17 = vpop.f32.mrf.mxu3 }
 0x295   :  { %v804_v18 = vadd.f32 %v1184_v59, %v803_v17 }
 0x297   :  { %v833_v20 = vmax.f32 %v804_v18, 0.0 }
 0x299   :  { %v846_v21 = vpack.c.bf16 %v833_v20, %v832_v19 }
 0x29b   :  { %v869_v55 = vsel %vm855_vm2, %v846_v21, 0 }
 0x29c   :  { %v806_v22 = vpop.f32.mrf.mxu3 }
 0x29d   :  { %v807_v23 = vadd.f32 %v1184_v59, %v806_v22 }
 0x29f   :  { %v834_v26 = vmax.f32 %v807_v23, 0.0 }
 0x2a4   :  { %v808_v24 = vpop.f32.mrf.mxu3 }
 0x2a5   :  { %v809_v25 = vadd.f32 %v1184_v59, %v808_v24 }
 0x2a7   :  { %v835_v27 = vmax.f32 %v809_v25, 0.0 }
 0x2a9   :  { %v847_v28 = vpack.c.bf16 %v835_v27, %v834_v26 }
 0x2ab   :  { %v872_v54 = vsel %vm855_vm2, %v847_v28, 0 }
 0x2b2   :  { %v811_v29 = vpop.f32.mrf.mxu3 }
 0x2b3   :  { %v812_v48 = vadd.f32 %v1184_v59, %v811_v29 }
 0x2b5   :  { %v836_v51 = vmax.f32 %v812_v48, 0.0 }
 0x2ba   :  { %v813_v30 = vpop.f32.mrf.mxu3 }
 0x2bb   :  { %v814_v46 = vadd.f32 %v1184_v59, %v813_v30 }
 0x2bd   :  { %v837_v49 = vmax.f32 %v814_v46, 0.0 }
 0x2bf   :  { %v848_v52 = vpack.c.bf16 %v837_v49, %v836_v51 }
 0x2c1   :  { %v875_v53 = vsel %vm855_vm2, %v848_v52, 0 }
 0x2c2   :  { %v816_v31 = vpop.f32.mrf.mxu3 }
 0x2c3   :  { %v817_v40 = vadd.f32 %v1184_v59, %v816_v31 }
 0x2c5   :  { %v838_v45 = vmax.f32 %v817_v40, 0.0 }
 0x2ca   :  { %v818_v32 = vpop.f32.mrf.mxu3 }
 0x2cb   :  { %v819_v37 = vadd.f32 %v1184_v59, %v818_v32 }
 0x2cd   :  { %v839_v42 = vmax.f32 %v819_v37, 0.0 }
 0x2cf   :  { %v849_v47 = vpack.c.bf16 %v839_v42, %v838_v45 }
 0x2d1   :  { %v878_v50 = vsel %vm855_vm2, %v849_v47, 0 }
 0x2d2   :  { %v821_v33 = vpop.f32.mrf.mxu3 }
 0x2d3   :  { %v822_v34 = vadd.f32 %v1184_v59, %v821_v33 }
 0x2d5   :  { %v840_v38 = vmax.f32 %v822_v34, 0.0 }
 0x2da   :  { %v823_v35 = vpop.f32.mrf.mxu3 }
 0x2db   :  { %v824_v36 = vadd.f32 %v1184_v59, %v823_v35  ;;  %v860_v59 = vsel %vm855_vm2, %v1478_v1, 0 }
 0x2dd   :  { %v841_v39 = vmax.f32 %v824_v36, 0.0 }
 0x2df   :  { %v850_v41 = vpack.c.bf16 %v841_v39, %v840_v38 }
 0x2e1   :  { %v881_v44 = vsel %vm855_vm2, %v850_v41, 0 }
 0x2e2   :  { %883 = vmatpush.bf16.xpose.msrb.mxu0 %v881_v44 }
 0x2ea   :  { %884 = vmatpush.bf16.xpose.msrb.mxu0 %v878_v50 }
 0x2f2   :  { %885 = vmatpush.bf16.xpose.msrb.mxu0 %v875_v53 }
 0x2fa   :  { %886 = vmatpush.bf16.xpose.msrb.mxu0 %v872_v54 }
 0x302   :  { %887 = vmatpush.bf16.xpose.msrb.mxu0 %v869_v55 }
 0x30a   :  { %888 = vmatpush.bf16.xpose.msrb.mxu0 %v866_v57 }
 0x312   :  { %889 = vmatpush.bf16.xpose.msrb.mxu0 %v863_v58 }
 0x31a   :  { %890 = vmatpush.bf16.xpose.msrb.mxu0 %v860_v59 }
 0x321   :  { %1115 = vmatmul.msk.bf16.vlgmr.msrb.gmra.mxu0 %vm855_vm2, %v842_v60 }
 0x39e   :  { %v892_v62 = vpop.f32.mrf.mxu0 }
 0x39f   :  { %v893_v63 = vadd.f32 %v892_v62, %v853_v61 }
 0x3a1   :  { %896 = vst [vmem:[#allocation7] sm:$0xff] %v893_v63 }
 0x3a2   :  { %907 = dma.vmem_to_hbm [thread:$0]  %s903_s19, 128, %s905_s3, [#allocation4]  }
 0x3a6   :  { %v894_v0 = vpop.f32.mrf.mxu0 }
 0x3a7   :  { %1261 = dma.done.wait [#allocation4], 128  }
 0x3a8   :  { %1262 = vsyncadd [#allocation4], 4294967168 }
 0x3a9   :  { %912 = vsyncpa [#allocation3], 1 }
 0x3aa   :  { %913 = vsyncpa [#allocation6], 1 }
 0x3ab   :  { %914 = vsyncpa [#allocation4], 1 }

</bundles_post_ra>
